<compile_context>
chip_gen: v6e
topology: v6e:2x2x1
jax: 0.10.0
libtpu: 0.0.40
codegen_flags: <defaults>
</compile_context>

<pallas_src>
import jax
import jax.numpy as jnp
from jax.experimental import pallas as pl
from jax.experimental.pallas import tpu as pltpu


_TARGET_BLOCK_BYTES = 4 * 1024 * 1024  # ~4 MiB output tiles (2x double-buffered = 8 MiB)


def _round_up(x: int, m: int) -> int:
    return ((x + m - 1) // m) * m


def _round_down(x: int, m: int) -> int:
    return (x // m) * m


def _rotary_kernel(scale_ref, bias_ref, out_ref):
    # out_ref block: (ts, W); scale_ref / bias_ref: (1, W).
    ts, _ = out_ref.shape
    row0 = pl.program_id(0) * ts
    # Column iota (ts, 1): only ts elements of iota/add/cast work per tile,
    # broadcast against the (1, W) per-lane scale/bias in the FMA below.
    pos = (row0 + jax.lax.broadcasted_iota(jnp.int32, (ts, 1), 0)).astype(jnp.float32)
    out_ref[...] = pos * scale_ref[...] + bias_ref[...]


def rotary_embedding(max_seq_len: int, dim: int) -> jnp.ndarray:
    """Returns (max_seq_len, dim) float32 rotary frequency table."""
    assert dim % 2 == 0, "dim must be even"

    # Deterministic "parameter" init, matching the PyTorch buffer exactly.
    inv_freq = 1.0 / (10000.0 ** (jnp.arange(0, dim, 2, dtype=jnp.float32) / dim))
    inv_freq_full = jnp.concatenate([inv_freq, inv_freq], axis=-1)  # (dim,)  = cat((f, f))

    # Lane-dense packing for small head dims: pack r consecutive positions per
    # slab row so the stored width W = r*dim is a full 128-lane multiple.
    if dim < 128 and 128 % dim == 0:
        r = 128 // dim
    else:
        r = 1
    W = r * dim
    s_pad = _round_up(max_seq_len, r)
    s_slab = s_pad // r

    # Slab element [i, c] = (i*r + c//dim) * inv_freq_full[c % dim]
    #                     = i * scale[c] + bias[c]
    sub = (jnp.arange(W, dtype=jnp.int32) // dim).astype(jnp.float32)  # c // dim
    ivf = jnp.tile(inv_freq_full, (r,))                                # inv_freq[c % dim]
    scale = (float(r) * ivf).reshape(1, W)
    bias = (sub * ivf).reshape(1, W)

    # ---- Tile the slab-sequence axis ------------------------------------
    row_bytes = W * 4
    big_ts = max(8, _round_down(max(_TARGET_BLOCK_BYTES // row_bytes, 8), 8))
    if s_slab <= big_ts:
        if s_slab >= 16:
            # Whole table fits in one target block: split into 2 steps so
            # both v7x TensorCores get work (harmless on v5e/v6e).
            ts = _round_up(-(-s_slab // 2), 8)
        else:
            # Tiny table: single full-extent block (no 8-divisibility needed).
            ts = s_slab
    else:
        ts = big_ts
    grid = (pl.cdiv(s_slab, ts),)

    block_bytes = ts * W * 4
    # 2x double-buffered output block + double-buffered tiny inputs + slack.
    vmem_limit = 2 * block_bytes + 4 * max(row_bytes, 8 * 128 * 4) + (1 << 20)

    out_slab = pl.pallas_call(
        _rotary_kernel,
        out_shape=jax.ShapeDtypeStruct((s_slab, W), jnp.float32),
        grid=grid,
        in_specs=[pl.BlockSpec((1, W), lambda i: (0, 0)),
                  pl.BlockSpec((1, W), lambda i: (0, 0))],
        out_specs=pl.BlockSpec((ts, W), lambda i: (i, 0)),
        compiler_params=pltpu.CompilerParams(
            dimension_semantics=("parallel",),
            vmem_limit_bytes=int(vmem_limit),
        ),
    )(scale, bias)

    out = out_slab.reshape(s_pad, dim)
    if s_pad != max_seq_len:
        out = out[:max_seq_len]
    return out


def rotary_embedding_ref(max_seq_len: int, dim: int) -> jnp.ndarray:
    inv_freq = 1.0 / (10000.0 ** (jnp.arange(0, dim, 2, dtype=jnp.float32) / dim))
    seq = jnp.arange(max_seq_len, dtype=jnp.float32)
    freqs = jnp.einsum("i,j->ij", seq, inv_freq)
    return jnp.concatenate([freqs, freqs], axis=-1)


if __name__ == "__main__":
    # forward() only takes max_seq_len; PRNGKey kept for protocol consistency.
    _ = jax.random.PRNGKey(0)

    # 1) Small case consistent with module-size hints (seq=8, hidden=32):
    #    exercises the lane-dense r=4 packing path.
    out = jax.block_until_ready(rotary_embedding(8, 32))
    ref = rotary_embedding_ref(8, 32)
    assert out.shape == (8, 32) and out.dtype == jnp.float32
    assert jnp.allclose(out, ref, atol=1e-6, rtol=1e-6), "mismatch (dim=32)"

    # 2) PaLM default head dim 64 (r=2), ragged seq len -> pad+slice path.
    out = jax.block_until_ready(rotary_embedding(13, 64))
    ref = rotary_embedding_ref(13, 64)
    assert out.shape == (13, 64)
    assert jnp.allclose(out, ref, atol=1e-6, rtol=1e-6), "mismatch (dim=64)"

    # 3) Larger lane-dense case (dim=128, r=1) exercising the multi-step
    #    pipelined/parallel grid (two 520-row blocks).
    out = jax.block_until_ready(rotary_embedding(1040, 128))
    ref = rotary_embedding_ref(1040, 128)
    assert out.shape == (1040, 128)
    assert jnp.allclose(out, ref, atol=1e-5, rtol=1e-5), "mismatch (dim=128)"

    print("KERNEL_OK")
</pallas_src>

<mosaic_0001>
module attributes {stable_mosaic.version = 11 : i64} {
  func.func @_rotary_kernel(%arg0: i32, %arg1: memref<1x128xf32, #tpu.memory_space<vmem>>, %arg2: memref<1x128xf32, #tpu.memory_space<vmem>>, %arg3: memref<2x128xf32, #tpu.memory_space<vmem>>) attributes {dimension_semantics = [#tpu.dimension_semantics<parallel>], iteration_bounds = array<i64: 1>, scalar_prefetch = 0 : i64, scratch_operands = 0 : i64, tpu.core_type = #tpu.core_type<tc>, window_params = [{pipeline_mode = #tpu.pipeline_mode<synchronous>, transform_indices = @transform_0, window_bounds = array<i64: 1, 128>}, {pipeline_mode = #tpu.pipeline_mode<synchronous>, transform_indices = @transform_1, window_bounds = array<i64: 1, 128>}, {transform_indices = @transform_2, window_bounds = array<i64: 2, 128>}]} {
    %c2_i32 = arith.constant 2 : i32
    %0 = arith.muli %arg0, %c2_i32 : i32
    %1 = tpu.iota {dimensions = array<i32: 0>} : vector<2x1xi32>
    %2 = vector.broadcast %0 : i32 to vector<2x1xi32>
    %3 = arith.addi %2, %1 : vector<2x1xi32>
    %4 = arith.sitofp %3 : vector<2x1xi32> to vector<2x1xf32>
    %c0 = arith.constant 0 : index
    %c0_0 = arith.constant 0 : index
    %5 = vector.load %arg1[%c0, %c0_0] : memref<1x128xf32, #tpu.memory_space<vmem>>, vector<1x128xf32>
    %6 = vector.broadcast %4 : vector<2x1xf32> to vector<2x128xf32>
    %7 = vector.broadcast %5 : vector<1x128xf32> to vector<2x128xf32>
    %8 = arith.mulf %6, %7 : vector<2x128xf32>
    %c0_1 = arith.constant 0 : index
    %c0_2 = arith.constant 0 : index
    %9 = vector.load %arg2[%c0_1, %c0_2] : memref<1x128xf32, #tpu.memory_space<vmem>>, vector<1x128xf32>
    %10 = vector.broadcast %9 : vector<1x128xf32> to vector<2x128xf32>
    %11 = arith.addf %8, %10 : vector<2x128xf32>
    %c0_3 = arith.constant 0 : index
    %c0_4 = arith.constant 0 : index
    %12 = vector.load %arg3[%c0_3, %c0_4] : memref<2x128xf32, #tpu.memory_space<vmem>>, vector<2x128xf32>
    tpu.vector_store %arg3[%c0_3, %c0_4], %11 {strides = array<i32>} : memref<2x128xf32, #tpu.memory_space<vmem>>, vector<2x128xf32>,
    return
  }
  func.func @transform_0(%arg0: i32) -> (i32, i32) {
    %c0_i32 = arith.constant 0 : i32
    %c0_i32_0 = arith.constant 0 : i32
    %c0_i32_1 = arith.constant 0 : i32
    return %c0_i32, %c0_i32_0 : i32, i32
  }
  func.func @transform_1(%arg0: i32) -> (i32, i32) {
    %c0_i32 = arith.constant 0 : i32
    %c0_i32_0 = arith.constant 0 : i32
    %c0_i32_1 = arith.constant 0 : i32
    return %c0_i32, %c0_i32_0 : i32, i32
  }
  func.func @transform_2(%arg0: i32) -> (i32, i32) {
    %c0_i32 = arith.constant 0 : i32
    %c0_i32_0 = arith.constant 0 : i32
    return %arg0, %c0_i32 : i32, i32
  }
}

</mosaic_0001>

<bundles_post_ra>
// kernel: tpu_custom_call.1
= control target key start
LH: loop header
LB: loop body
LE: loop exit
PB: predicated region body
PF: predicated region fallthrough
CT: control target
= control target key end

     0   :  { %7 = vsyncpa [#allocation3], 0  ;;  %s136_s0 = inlined_call_operand.hbm [shape: f32[1,128], index: 0, kind: input, shape index: {}]   ;;  %s137_s1 = inlined_call_operand.vmem [shape: f32[1,128], index: 1, kind: input, shape index: {}]   ;;  %s138_s2 = inlined_call_operand.hbm [shape: f32[2,128], index: 2, kind: output, shape index: {}]  }
   0x1   :  { %8 = vsyncpa [#allocation4], 0  ;;  %s110_s9 = smov [#allocation2]  }
   0x2   :  { %s15_s10 = sshll.u32 %s110_s9, 4  ;;  %s16_s10 = int_to_ptr.vmem [resolvable:$true] %s15_s10 }
   0x3   :  { %s74_s11 = scalar_lea.vmem %s16_s10, 16  ;;  %s78_s12 = scalar_lea.vmem %s16_s10, 32 }
   0x4   :  { %p75_p0 = scmp.ne.s32.totalorder %s16_s10, %s74_s11  ;;  %p79_p1 = scmp.lt.s32.totalorder %s16_s10, %s16_s10 }
   0x5   :  { %p80_p2 = scmp.lt.s32.totalorder %s78_s12, %s74_s11 }
   0x7   :  { %p81_p3 = por %p80_p2, %p79_p1 }
   0x9   :  { %p82_p4 = pnand %p81_p3, %p75_p0 }
   0xb   :  { %85 = shalt.err (!%p82_p4)
}
   0xc   :  { %18 = dma.hbm_to_vmem [thread:$0]  %s136_s0, 16, %s16_s10, [#allocation3]  }
   0xd   :  { %106 = dma.done.wait [#allocation3], 16  }
   0xe   :  { %107 = vsyncadd [#allocation3], 4294967280  ;;  %v25_v0 = vlaneseq  ;;  %v62_v3 = vld [vmem:[#allocation2] ss:$0 sm:$0xff]  ;;  %s111_s17 = smov [#allocation5]  }
   0xf   :  { %v63_v4 = vld [vmem:[%s137_s1] ss:$0 sm:$0xff]  ;;  %s53_s18 = sshll.u32 %s111_s17, 4  ;;  %s54_s18 = int_to_ptr.vmem [resolvable:$true] %s53_s18 }
  0x10   :  { %v26_v1 = vshrl.u32 %v25_v0, 7  ;;  %s86_s19 = scalar_lea.vmem %s54_s18, 32  ;;  %p91_p6 = scmp.lt.s32.totalorder %s54_s18, %s54_s18 }
  0x11   :  { %p87_p5 = scmp.ne.s32.totalorder %s54_s18, %s86_s19  ;;  %p92_p7 = scmp.lt.s32.totalorder %s86_s19, %s86_s19 }
  0x12   :  { %v29_v2 = vcvt.s32.f32 %v26_v1 }
  0x13   :  { %p93_p8 = por %p92_p7, %p91_p6 }
  0x14   :  { %v37_v5 = vmul.f32 %v62_v3, %v29_v2 }
  0x15   :  { %p94_p9 = pnand %p93_p8, %p87_p5 }
  0x16   :  { %v45_v6 = vadd.f32 %v63_v4, %v37_v5 }
  0x18   :  { %46 = vst [vmem:[#allocation5] sm:$0x3] %v45_v6 }
  0x19   :  { %97 = shalt.err (!%p94_p9)
}
  0x1a   :  { %56 = dma.vmem_to_hbm [thread:$0]  %s54_s18, 32, %s138_s2, [#allocation4]  }
  0x1b   :  { %108 = dma.done.wait [#allocation4], 32  }
  0x1c   :  { %109 = vsyncadd [#allocation4], 4294967264 }
  0x1d   :  { %60 = vsyncpa [#allocation3], 1 }
  0x1e   :  { %61 = vsyncpa [#allocation4], 1 }

</bundles_post_ra>
